<compile_context>
chip_gen: v6e
topology: v6e:2x2x1
jax: 0.10.0
libtpu: 0.0.40
codegen_flags: <defaults>
</compile_context>

<pallas_src>
import functools

import jax
import jax.numpy as jnp
from jax.experimental import pallas as pl
from jax.experimental.pallas import tpu as pltpu


def _additive_attention_kernel(x_ref, w1_ref, b1_ref, w2_ref, o_ref, *, seq_len, mm_dtype):
    # x_ref:  (R, D)   R = TB * seq_len rows (TB batch elements, sequence-major)
    # w1_ref: (D, Hp)  first Linear weight (transposed, zero-padded to Hp lanes), mm_dtype
    # b1_ref: (1, Hp)  first Linear bias (zero-padded), f32
    # w2_ref: (1, Hp)  second Linear weight as a row (zero-padded, no bias), f32
    # o_ref:  (R, D)
    r, _ = x_ref.shape
    tb = r // seq_len

    # Scores: Linear(D->H) + tanh on the MXU (mm_dtype operands, f32 accumulation),
    # then Linear(H->1, no bias) as a lane-reduce (avoids a near-empty N=1 matmul).
    h = jnp.tanh(
        jnp.dot(x_ref[...].astype(mm_dtype), w1_ref[...],
                preferred_element_type=jnp.float32)
        + b1_ref[...]
    )                                                           # (R, Hp) f32
    scores = jnp.sum(h * w2_ref[...], axis=-1, keepdims=True)   # (R, 1)  f32
    scores = scores.reshape(tb, seq_len, 1)

    # Softmax over the sequence axis (dim=-2 in the PyTorch module); exact division.
    m = jnp.max(scores, axis=1, keepdims=True)                  # (TB, 1, 1)
    e = jnp.exp(scores - m)
    attn = e / jnp.sum(e, axis=1, keepdims=True)                # (TB, S, 1) f32

    # Epilogue: re-read x from the already-resident VMEM input tile and weight it in the
    # I/O dtype (attn cast once) - halves VPU work / vreg pressure for bf16 I/O.
    o_ref[...] = x_ref[...] * attn.reshape(r, 1).astype(o_ref.dtype)


def _largest_divisor_leq(n: int, cap: int) -> int:
    cap = max(1, min(n, cap))
    for d in range(cap, 0, -1):
        if n % d == 0:
            return d
    return 1


def _vmem_capacity_bytes() -> int:
    try:
        cap = getattr(pltpu.get_tpu_info(), "vmem_capacity_bytes", None)
        if cap:
            return int(cap)
    except Exception:
        pass
    return 64 << 20  # conservative fallback (v7x-sized part)


def _pick_block_batch(B, S, D, Hp, io_itemsize, mm_copy_itemsize, vmem_capacity):
    """Batch elements per grid step.

    Per-row VMEM cost model (row = one sequence position):
      * double-buffered input + output tiles : 4 * D * io_itemsize
      * in-kernel matmul-operand copy (cast) : D * mm_copy_itemsize
      * f32 hidden activations h             : Hp * 4
    Budget / row target are per generation: ~48 MiB & 2048 rows on 128 MiB parts
    (v5e/v6e), ~20 MiB & 1024 rows on v7x (64 MiB VMEM).
    """
    per_row = 4 * D * io_itemsize + D * mm_copy_itemsize + Hp * 4 + 64
    if vmem_capacity >= (96 << 20):
        budget, target_rows = 48 << 20, 2048
    else:
        budget, target_rows = 20 << 20, 1024
    cap_tb = max(1, (budget // per_row) // S)
    want_tb = max(1, -(-target_rows // S))  # ceil(target_rows / S)
    tb = _largest_divisor_leq(B, min(cap_tb, want_tb))

    # Prefer >= 8 grid steps (>= 3-4 per v7x TensorCore) so the pipeline has work to
    # overlap, as long as tiles stay >= ~1 MiB.
    min_tile_bytes = 1 << 20
    while B // tb < 8 and tb > 1:
        smaller = _largest_divisor_leq(B, tb - 1)
        if smaller * S * D * io_itemsize < min_tile_bytes:
            break
        tb = smaller

    # Row block (tb*S) must be a sublane multiple unless it spans the whole array.
    if (tb * S) % 8 != 0 and tb != B:
        fixed = None
        for cand in range(tb, 0, -1):
            if B % cand == 0 and (cand * S) % 8 == 0:
                fixed = cand
                break
        tb = fixed if fixed is not None else B
    return tb


def additive_attention(x, w1, b1, w2, *, block_batch=None, matmul_dtype=None):
    """x: (B, S, D); w1: (D, H) (transpose of torch Linear(D,H).weight); b1: (H,); w2: (H, 1)."""
    B, S, D = x.shape
    H = w1.shape[1]

    # MXU operands default to bf16 (f32 MXU matmul is a slow multi-pass decomposition);
    # accumulation, tanh and softmax stay f32 inside the kernel.
    if matmul_dtype is None:
        matmul_dtype = jnp.bfloat16 if x.dtype == jnp.float32 else x.dtype
    matmul_dtype = jnp.dtype(matmul_dtype)

    # Zero-pad the hidden dim to a lane multiple (weights only, ~free): unmasked matmul
    # N-dim, tanh and H->1 lane-reduce.  tanh(0)=0 and padded w2 entries are 0 => inert.
    Hp = -(-H // 128) * 128
    w1_p = jnp.zeros((D, Hp), matmul_dtype).at[:, :H].set(w1.astype(matmul_dtype))
    b1_p = jnp.zeros((1, Hp), jnp.float32).at[:, :H].set(b1.reshape(1, H).astype(jnp.float32))
    w2_p = jnp.zeros((1, Hp), jnp.float32).at[:, :H].set(w2.reshape(1, H).astype(jnp.float32))

    vmem_cap = _vmem_capacity_bytes()
    mm_copy_itemsize = matmul_dtype.itemsize if matmul_dtype != x.dtype else 0
    TB = block_batch or _pick_block_batch(B, S, D, Hp, x.dtype.itemsize,
                                          mm_copy_itemsize, vmem_cap)
    assert B % TB == 0
    rows = TB * S
    grid = (B // TB,)

    # Keep the big tensor 2-D and sequence-major; the wrapper reshape is free in XLA and
    # removes any in-kernel relayout of the large tile when S % 8 != 0.
    x2d = x.reshape(B * S, D)

    # VMEM limit from the actual footprint + headroom, capped at 3/4 of physical VMEM.
    tile_bytes = rows * D * x.dtype.itemsize
    temp_bytes = rows * (D * mm_copy_itemsize + Hp * 4)
    weight_bytes = (D + 2) * Hp * 4
    vmem_limit = 4 * tile_bytes + temp_bytes + 2 * weight_bytes + (4 << 20)
    vmem_limit = int(max(16 << 20, min(vmem_limit, (vmem_cap * 3) // 4)))

    kernel = functools.partial(_additive_attention_kernel, seq_len=S, mm_dtype=matmul_dtype)

    # TODO(synk): if D % 128 != 0 at production scale, zero-pad the feature dim in the
    # producer (x columns + w1 rows) for lane-dense stores; a wrapper-side pad here would
    # itself cost an extra HBM pass on this memory-bound op, so it is not done by default.
    out2d = pl.pallas_call(
        kernel,
        out_shape=jax.ShapeDtypeStruct((B * S, D), x.dtype),
        grid_spec=pltpu.PrefetchScalarGridSpec(
            num_scalar_prefetch=0,
            grid=grid,
            in_specs=[
                pl.BlockSpec((rows, D), lambda b: (b, 0)),
                pl.BlockSpec((D, Hp), lambda b: (0, 0)),
                pl.BlockSpec((1, Hp), lambda b: (0, 0)),
                pl.BlockSpec((1, Hp), lambda b: (0, 0)),
            ],
            out_specs=pl.BlockSpec((rows, D), lambda b: (b, 0)),
        ),
        compiler_params=pltpu.CompilerParams(
            dimension_semantics=("parallel",),
            vmem_limit_bytes=vmem_limit,
        ),
    )(x2d, w1_p, b1_p, w2_p)
    return out2d.reshape(B, S, D)


def _xavier_uniform(key, fan_in, fan_out, shape):
    limit = jnp.sqrt(6.0 / (fan_in + fan_out))
    return jax.random.uniform(key, shape, jnp.float32, -limit, limit)


def additive_attention_reference(x, w1, b1, w2):
    """Pure-JAX reference mirroring the PyTorch forward (high-precision matmuls)."""
    h = jnp.tanh(jnp.dot(x, w1, precision=jax.lax.Precision.HIGHEST) + b1)
    scores = jnp.dot(h, w2, precision=jax.lax.Precision.HIGHEST)
    attn = jax.nn.softmax(scores, axis=-2)
    return x * attn


if __name__ == "__main__":
    key = jax.random.PRNGKey(0)
    k_x, k_w1, k_w2 = jax.random.split(key, 3)

    B, S, D, H = 16, 8, 32, 32  # small shapes consistent with the module

    x = jax.random.normal(k_x, (B, S, D), dtype=jnp.float32)
    # PyTorch Linear(D, H).weight is (H, D); we store its transpose so the kernel does x @ W.
    w1 = _xavier_uniform(k_w1, D, H, (D, H))
    b1 = jnp.zeros((H,), dtype=jnp.float32)
    w2 = _xavier_uniform(k_w2, H, 1, (H, 1))

    ref = additive_attention_reference(x, w1, b1, w2)

    # 1) f32 I/O with an f32 matmul: tight check of the kernel math.
    out_f32 = jax.block_until_ready(
        additive_attention(x, w1, b1, w2, matmul_dtype=jnp.float32))
    assert out_f32.shape == x.shape
    assert jnp.allclose(out_f32, ref, atol=2e-3, rtol=2e-3), "f32 mismatch vs reference"

    # 2) f32 I/O, default bf16 MXU operands (recommended fast path for f32 callers).
    out_mixed = jax.block_until_ready(additive_attention(x, w1, b1, w2))
    assert jnp.allclose(out_mixed, ref, atol=1e-1, rtol=1e-1), "mixed-precision mismatch"

    # 3) bf16 I/O end to end (halves HBM bytes on this memory-bound kernel).
    xb, w1b = x.astype(jnp.bfloat16), w1.astype(jnp.bfloat16)
    b1b, w2b = b1.astype(jnp.bfloat16), w2.astype(jnp.bfloat16)
    out_bf16 = jax.block_until_ready(additive_attention(xb, w1b, b1b, w2b))
    ref_bf16 = additive_attention_reference(
        xb.astype(jnp.float32), w1b.astype(jnp.float32),
        b1b.astype(jnp.float32), w2b.astype(jnp.float32))
    assert out_bf16.dtype == jnp.bfloat16
    assert jnp.allclose(out_bf16.astype(jnp.float32), ref_bf16, atol=1e-1, rtol=1e-1), \
        "bf16 mismatch vs reference"

    print("KERNEL_OK")
</pallas_src>

<mosaic_0001>
module attributes {stable_mosaic.version = 11 : i64} {
  func.func @_additive_attention_kernel(%arg0: i32, %arg1: memref<128x32xf32, #tpu.memory_space<vmem>>, %arg2: memref<32x128xf32, #tpu.memory_space<vmem>>, %arg3: memref<1x128xf32, #tpu.memory_space<vmem>>, %arg4: memref<1x128xf32, #tpu.memory_space<vmem>>, %arg5: memref<128x32xf32, #tpu.memory_space<vmem>>) attributes {dimension_semantics = [#tpu.dimension_semantics<parallel>], iteration_bounds = array<i64: 1>, scalar_prefetch = 0 : i64, scratch_operands = 0 : i64, tpu.core_type = #tpu.core_type<tc>, window_params = [{transform_indices = @transform_0, window_bounds = array<i64: 128, 32>}, {pipeline_mode = #tpu.pipeline_mode<synchronous>, transform_indices = @transform_1, window_bounds = array<i64: 32, 128>}, {pipeline_mode = #tpu.pipeline_mode<synchronous>, transform_indices = @transform_2, window_bounds = array<i64: 1, 128>}, {pipeline_mode = #tpu.pipeline_mode<synchronous>, transform_indices = @transform_3, window_bounds = array<i64: 1, 128>}, {transform_indices = @transform_4, window_bounds = array<i64: 128, 32>}]} {
    %c0 = arith.constant 0 : index
    %c0_0 = arith.constant 0 : index
    %0 = vector.load %arg1[%c0, %c0_0] : memref<128x32xf32, #tpu.memory_space<vmem>>, vector<128x32xf32>
    %c0_1 = arith.constant 0 : index
    %c0_2 = arith.constant 0 : index
    %1 = vector.load %arg2[%c0_1, %c0_2] : memref<32x128xf32, #tpu.memory_space<vmem>>, vector<32x128xf32>
    %cst = arith.constant dense<0.000000e+00> : vector<128x128xf32>
    %2 = tpu.matmul %0, %1, %cst {dimension_numbers = #tpu.dot_dimension_numbers<[1], [0], [0], [1], [0, 0, 1, 1], [], []>} : vector<128x32xf32>, vector<32x128xf32>, vector<128x128xf32> -> vector<128x128xf32>
    %c0_3 = arith.constant 0 : index
    %c0_4 = arith.constant 0 : index
    %3 = vector.load %arg3[%c0_3, %c0_4] : memref<1x128xf32, #tpu.memory_space<vmem>>, vector<1x128xf32>
    %4 = vector.broadcast %3 : vector<1x128xf32> to vector<128x128xf32>
    %5 = arith.addf %2, %4 : vector<128x128xf32>
    %6 = math.tanh %5 : vector<128x128xf32>
    %c0_5 = arith.constant 0 : index
    %c0_6 = arith.constant 0 : index
    %7 = vector.load %arg4[%c0_5, %c0_6] : memref<1x128xf32, #tpu.memory_space<vmem>>, vector<1x128xf32>
    %8 = vector.broadcast %7 : vector<1x128xf32> to vector<128x128xf32>
    %9 = arith.mulf %6, %8 : vector<128x128xf32>
    %cst_7 = arith.constant dense<0.000000e+00> : vector<128xf32>
    %10 = vector.multi_reduction <add>, %9, %cst_7 [1] : vector<128x128xf32> to vector<128xf32>
    %11 = vector.shape_cast %10 : vector<128xf32> to vector<128x1xf32>
    %12 = vector.shape_cast %11 : vector<128x1xf32> to vector<16x8x1xf32>
    %cst_8 = arith.constant dense<0xFF800000> : vector<16x1xf32>
    %13 = vector.multi_reduction <maximumf>, %12, %cst_8 [1] : vector<16x8x1xf32> to vector<16x1xf32>
    %14 = vector.shape_cast %13 : vector<16x1xf32> to vector<16x1x1xf32>
    %15 = vector.broadcast %14 : vector<16x1x1xf32> to vector<16x8x1xf32>
    %16 = arith.subf %12, %15 : vector<16x8x1xf32>
    %17 = math.exp %16 : vector<16x8x1xf32>
    %cst_9 = arith.constant dense<0.000000e+00> : vector<16x1xf32>
    %18 = vector.multi_reduction <add>, %17, %cst_9 [1] : vector<16x8x1xf32> to vector<16x1xf32>
    %19 = vector.shape_cast %18 : vector<16x1xf32> to vector<16x1x1xf32>
    %20 = vector.broadcast %19 : vector<16x1x1xf32> to vector<16x8x1xf32>
    %21 = arith.divf %17, %20 : vector<16x8x1xf32>
    %c0_10 = arith.constant 0 : index
    %c0_11 = arith.constant 0 : index
    %22 = vector.load %arg1[%c0_10, %c0_11] : memref<128x32xf32, #tpu.memory_space<vmem>>, vector<128x32xf32>
    %23 = vector.shape_cast %21 : vector<16x8x1xf32> to vector<128x1xf32>
    %24 = vector.broadcast %23 : vector<128x1xf32> to vector<128x32xf32>
    %25 = arith.mulf %22, %24 : vector<128x32xf32>
    %c0_12 = arith.constant 0 : index
    %c0_13 = arith.constant 0 : index
    %26 = vector.load %arg5[%c0_12, %c0_13] : memref<128x32xf32, #tpu.memory_space<vmem>>, vector<128x32xf32>
    tpu.vector_store %arg5[%c0_12, %c0_13], %25 {strides = array<i32>} : memref<128x32xf32, #tpu.memory_space<vmem>>, vector<128x32xf32>,
    return
  }
  func.func @transform_0(%arg0: i32) -> (i32, i32) {
    %c0_i32 = arith.constant 0 : i32
    %c0_i32_0 = arith.constant 0 : i32
    return %arg0, %c0_i32 : i32, i32
  }
  func.func @transform_1(%arg0: i32) -> (i32, i32) {
    %c0_i32 = arith.constant 0 : i32
    %c0_i32_0 = arith.constant 0 : i32
    %c0_i32_1 = arith.constant 0 : i32
    return %c0_i32, %c0_i32_0 : i32, i32
  }
  func.func @transform_2(%arg0: i32) -> (i32, i32) {
    %c0_i32 = arith.constant 0 : i32
    %c0_i32_0 = arith.constant 0 : i32
    %c0_i32_1 = arith.constant 0 : i32
    return %c0_i32, %c0_i32_0 : i32, i32
  }
  func.func @transform_3(%arg0: i32) -> (i32, i32) {
    %c0_i32 = arith.constant 0 : i32
    %c0_i32_0 = arith.constant 0 : i32
    %c0_i32_1 = arith.constant 0 : i32
    return %c0_i32, %c0_i32_0 : i32, i32
  }
  func.func @transform_4(%arg0: i32) -> (i32, i32) {
    %c0_i32 = arith.constant 0 : i32
    %c0_i32_0 = arith.constant 0 : i32
    return %arg0, %c0_i32 : i32, i32
  }
}

</mosaic_0001>

<bundles_post_ra>
// kernel: tpu_custom_call.1
= control target key start
LH: loop header
LB: loop body
LE: loop exit
PB: predicated region body
PF: predicated region fallthrough
CT: control target
= control target key end

     0   :  { %vm44_vm0 = vcmask 261120   ;;  %s1182_s1 = inlined_call_operand.vmem [shape: f32[32,128], index: 1, kind: input, shape index: {}]   ;;  %s1183_s0 = inlined_call_operand.vmem [shape: f32[128,32], index: 0, kind: input, shape index: {}]   ;;  %s1184_s2 = inlined_call_operand.vmem [shape: f32[1,128], index: 2, kind: input, shape index: {}]   ;;  %s1185_s3 = inlined_call_operand.vmem [shape: f32[1,128], index: 3, kind: input, shape index: {}]   ;;  %s1186_s4 = inlined_call_operand.vmem [shape: f32[128,32], index: 4, kind: output, shape index: {}]  }
   0x1   :  { %v36_v0 = vld [vmem:[%s1182_s1 + $0x18] sm:$0xff]  ;;  %v35_v1 = vld [vmem:[%s1182_s1 + $0x10] sm:$0xff]  ;;  %v34_v2 = vld [vmem:[%s1182_s1 + $0x8] sm:$0xff] }
   0x2   :  { %655 = vmatprep.subr.mxu0 %v36_v0  ;;  %687 = vmatprep.subr.mxu1 %v36_v0  ;;  %v33_v3 = vld [vmem:[%s1182_s1] sm:$0xff]  ;;  %v841_v6 = vld [vmem:[%s1183_s0 + $0x8] sm:$0xff]  ;;  %v851_v8 = vld [vmem:[%s1183_s0 + $0x10] sm:$0xff] }
   0x3   :  { %656 = vmatpush3.msra.mxu0 %v36_v0  ;;  %691 = vmatpush3.msra.mxu1 %v36_v0  ;;  %v831_v4 = vld [vmem:[%s1183_s0] sm:$0xff]  ;;  %v846_v7 = vld [vmem:[%s1183_s0 + $0x48] sm:$0xff]  ;;  %v856_v9 = vld [vmem:[%s1183_s0 + $0x50] sm:$0xff] }
   0x4   :  { %657 = vmatprep.subr.mxu0 %v35_v1  ;;  %688 = vmatprep.subr.mxu1 %v35_v1  ;;  %v836_v5 = vld [vmem:[%s1183_s0 + $0x40] sm:$0xff]  ;;  %v871_v10 = vld [vmem:[%s1183_s0 + $0x18] sm:$0xff]  ;;  %v899_v14 = vld [vmem:[%s1183_s0 + $0x28] sm:$0xff] }
   0x5   :  { %658 = vmatpush3.msra.mxu0 %v35_v1  ;;  %692 = vmatpush3.msra.mxu1 %v35_v1  ;;  %v878_v11 = vld [vmem:[%s1183_s0 + $0x58] sm:$0xff]  ;;  %v883_v12 = vld [vmem:[%s1183_s0 + $0x20] sm:$0xff]  ;;  %v906_v15 = vld [vmem:[%s1183_s0 + $0x68] sm:$0xff] }
   0x6   :  { %659 = vmatprep.subr.mxu0 %v34_v2  ;;  %689 = vmatprep.subr.mxu1 %v34_v2  ;;  %v888_v13 = vld [vmem:[%s1183_s0 + $0x60] sm:$0xff]  ;;  %v911_v16 = vld [vmem:[%s1183_s0 + $0x30] sm:$0xff]  ;;  %v927_v18 = vld [vmem:[%s1183_s0 + $0x38] sm:$0xff] }
   0x7   :  { %660 = vmatpush3.msra.mxu0 %v34_v2  ;;  %693 = vmatpush3.msra.mxu1 %v34_v2  ;;  %v916_v17 = vld [vmem:[%s1183_s0 + $0x70] sm:$0xff]  ;;  %v934_v19 = vld [vmem:[%s1183_s0 + $0x78] sm:$0xff]  ;;  %v943_v20 = vld [vmem:[%s1184_s2] ss:$0 sm:$0xff] }
   0x8   :  { %661 = vmatprep.subr.mxu0 %v33_v3  ;;  %690 = vmatprep.subr.mxu1 %v33_v3  ;;  %v958_v43 = vld [vmem:[%s1185_s3] ss:$0 sm:$0xff] }
   0x9   :  { %662 = vmatpush3.msra.mxu0 %v33_v3  ;;  %694 = vmatpush3.msra.mxu1 %v33_v3 }
   0xa   :  { %663 = vmatprep.mubr.msk.f32.mxu0 %vm44_vm0, %v831_v4  ;;  %675 = vmatprep.mubr.msk.f32.mxu1 %vm44_vm0, %v836_v5 }
   0xb   :  { %664 = vmatmul.mubr.msk.f32.vlgmr.msra.gmra.mxu0 %vm44_vm0, %v841_v6  ;;  %676 = vmatmul.mubr.msk.f32.vlgmr.msra.gmra.mxu1 %vm44_vm0, %v846_v7 }
   0xc   :  { %666 = vmatprep.mubr.msk.f32.mxu0 %vm44_vm0, %v851_v8  ;;  %678 = vmatprep.mubr.msk.f32.mxu1 %vm44_vm0, %v856_v9 }
   0xf   :  { %667 = vmatmul.mubr.msk.f32.gmra.mxu0 %vm44_vm0, %v871_v10  ;;  %679 = vmatmul.mubr.msk.f32.gmra.mxu1 %vm44_vm0, %v878_v11 }
  0x10   :  { %669 = vmatprep.mubr.msk.f32.mxu0 %vm44_vm0, %v883_v12  ;;  %681 = vmatprep.mubr.msk.f32.mxu1 %vm44_vm0, %v888_v13 }
  0x13   :  { %670 = vmatmul.mubr.msk.f32.gmra.mxu0 %vm44_vm0, %v899_v14  ;;  %682 = vmatmul.mubr.msk.f32.gmra.mxu1 %vm44_vm0, %v906_v15 }
  0x14   :  { %672 = vmatprep.mubr.msk.f32.mxu0 %vm44_vm0, %v911_v16  ;;  %684 = vmatprep.mubr.msk.f32.mxu1 %vm44_vm0, %v916_v17 }
  0x17   :  { %673 = vmatmul.mubr.msk.f32.gmra.mxu0 %vm44_vm0, %v927_v18  ;;  %685 = vmatmul.mubr.msk.f32.gmra.mxu1 %vm44_vm0, %v934_v19 }
  0xcb   :  { %v665_v21 = vpop.f32.mrf.mxu0  ;;  %v677_v22 = vpop.f32.mrf.mxu1 }
  0xcc   :  { %v165_v23 = vadd.f32 %v665_v21, %v943_v20  ;;  %v205_v24 = vadd.f32 %v677_v22, %v943_v20 }
  0xcd   :  { %v159_v25 = vpop.f32.mrf.mxu0  ;;  %v199_v26 = vpop.f32.mrf.mxu1 }
  0xce   :  { %695 = vtanh.f32 %v165_v23  ;;  %v160_v27 = vadd.f32 %v943_v20, %v159_v25  ;;  %v200_v30 = vadd.f32 %v943_v20, %v199_v26 }
  0xcf   :  { %697 = vtanh.f32 %v205_v24  ;;  %v668_v28 = vpop.f32.mrf.mxu0  ;;  %v680_v29 = vpop.f32.mrf.mxu1 }
  0xd0   :  { %699 = vtanh.f32 %v160_v27  ;;  %v175_v31 = vadd.f32 %v668_v28, %v943_v20  ;;  %v215_v32 = vadd.f32 %v680_v29, %v943_v20 }
  0xd1   :  { %v169_v33 = vpop.f32.mrf.mxu0  ;;  %v209_v34 = vpop.f32.mrf.mxu1 }
  0xd2   :  { %701 = vtanh.f32 %v175_v31  ;;  %v210_v36 = vadd.f32 %v943_v20, %v209_v34  ;;  %v170_v37 = vadd.f32 %v943_v20, %v169_v33 }
  0xd3   :  { %703 = vtanh.f32 %v215_v32  ;;  %v671_v35 = vpop.f32.mrf.mxu0  ;;  %v683_v39 = vpop.f32.mrf.mxu1 }
  0xd4   :  { %705 = vtanh.f32 %v200_v30  ;;  %v185_v41 = vadd.f32 %v671_v35, %v943_v20  ;;  %v225_v50 = vadd.f32 %v683_v39, %v943_v20 }
  0xd5   :  { %v179_v38 = vpop.f32.mrf.mxu0  ;;  %707 = vtanh.f32 %v210_v36  ;;  %v219_v42 = vpop.f32.mrf.mxu1 }
  0xd6   :  { %v180_v40 = vadd.f32 %v943_v20, %v179_v38  ;;  %709 = vtanh.f32 %v170_v37  ;;  %v220_v47 = vadd.f32 %v943_v20, %v219_v42 }
  0xd7   :  { %v674_v44 = vpop.f32.mrf.mxu0  ;;  %v686_v53 = vpop.f32.mrf.mxu1 }
  0xd8   :  { %711 = vtanh.f32 %v180_v40  ;;  %v195_v60 = vadd.f32 %v674_v44, %v943_v20  ;;  %v235_v2 = vadd.f32 %v686_v53, %v943_v20 }
  0xd9   :  { %713 = vtanh.f32 %v185_v41  ;;  %v189_v52 = vpop.f32.mrf.mxu0  ;;  %v229_v61 = vpop.f32.mrf.mxu1 }
  0xda   :  { %715 = vtanh.f32 %v220_v47  ;;  %v190_v56 = vadd.f32 %v943_v20, %v189_v52  ;;  %v230_v63 = vadd.f32 %v943_v20, %v229_v61 }
  0xdb   :  { %v696_v45 = vpop.eup %695  ;;  %717 = vtanh.f32 %v225_v50 }
  0xdc   :  { %v698_v46 = vpop.eup %697  ;;  %v262_v48 = vmul.f32 %v696_v45, %v958_v43  ;;  %719 = vtanh.f32 %v190_v56 }
  0xdd   :  { %v700_v49 = vpop.eup %699  ;;  %v270_v51 = vmul.f32 %v698_v46, %v958_v43  ;;  %721 = vtanh.f32 %v195_v60 }
  0xde   :  { %279 = vadd.xlane.f32.xlu0 %v262_v48  ;;  %v261_v58 = vmul.f32 %v700_v49, %v958_v43  ;;  %723 = vtanh.f32 %v230_v63 }
  0xdf   :  { %v702_v54 = vpop.eup %701  ;;  %295 = vadd.xlane.f32.xlu1 %v270_v51  ;;  %725 = vtanh.f32 %v235_v2 }
  0xe0   :  { %v704_v55 = vpop.eup %703  ;;  %v264_v57 = vmul.f32 %v702_v54, %v958_v43 }
  0xe1   :  { %v706_v59 = vpop.eup %705  ;;  %v272_v62 = vmul.f32 %v704_v55, %v958_v43 }
  0xe2   :  { %277 = vadd.xlane.f32.xlu0 %v261_v58  ;;  %v269_v0 = vmul.f32 %v706_v59, %v958_v43  ;;  %v708_v1 = vpop.eup %707 }
  0xe3   :  { %283 = vadd.xlane.f32.xlu1 %v264_v57  ;;  %v710_v3 = vpop.eup %709  ;;  %v271_v21 = vmul.f32 %v708_v1, %v958_v43 }
  0xe4   :  { %v263_v23 = vmul.f32 %v710_v3, %v958_v43 }
  0xe5   :  { %v712_v22 = vpop.eup %711 }
  0xe6   :  { %293 = vadd.xlane.f32.xlu0 %v269_v0  ;;  %v714_v24 = vpop.eup %713  ;;  %v265_v25 = vmul.f32 %v712_v22, %v958_v43 }
  0xe7   :  { %299 = vadd.xlane.f32.xlu1 %v272_v62  ;;  %v716_v26 = vpop.eup %715  ;;  %v266_v27 = vmul.f32 %v714_v24, %v958_v43 }
  0xe8   :  { %v718_v28 = vpop.eup %717  ;;  %v273_v20 = vmul.f32 %v716_v26, %v958_v43 }
  0xe9   :  { %v720_v29 = vpop.eup %719  ;;  %v274_v30 = vmul.f32 %v718_v28, %v958_v43 }
  0xea   :  { %297 = vadd.xlane.f32.xlu0 %v271_v21  ;;  %v722_v31 = vpop.eup %721  ;;  %v267_v32 = vmul.f32 %v720_v29, %v958_v43 }
  0xeb   :  { %281 = vadd.xlane.f32.xlu1 %v263_v23  ;;  %v724_v33 = vpop.eup %723  ;;  %v268_v34 = vmul.f32 %v722_v31, %v958_v43 }
  0xec   :  { %v726_v35 = vpop.eup %725  ;;  %v275_v36 = vmul.f32 %v724_v33, %v958_v43 }
  0xed   :  { %v276_v37 = vmul.f32 %v726_v35, %v958_v43 }
  0xee   :  { %285 = vadd.xlane.f32.xlu0 %v265_v25 }
  0xef   :  { %287 = vadd.xlane.f32.xlu1 %v266_v27 }
  0xf2   :  { %301 = vadd.xlane.f32.xlu0 %v273_v20 }
  0xf3   :  { %303 = vadd.xlane.f32.xlu1 %v274_v30 }
  0xf6   :  { %289 = vadd.xlane.f32.xlu0 %v267_v32 }
  0xf7   :  { %291 = vadd.xlane.f32.xlu1 %v268_v34 }
  0xfa   :  { %305 = vadd.xlane.f32.xlu0 %v275_v36 }
  0xfb   :  { %307 = vadd.xlane.f32.xlu1 %v276_v37 }
 0x167   :  { %v280_v38 = vpop.xlane.xlu0 %279 }
 0x168   :  { %v296_v39 = vpop.xlane.xlu1 %295  ;;  %v315_v40 = vrot.slane %v280_v38, 4 }
 0x169   :  { %v363_v41 = vrot.slane %v296_v39, 4 }
 0x16a   :  { %v316_v42 = vmax.f32 %v280_v38, %v315_v40 }
 0x16b   :  { %v364_v44 = vmax.f32 %v296_v39, %v363_v41  ;;  %v278_v45 = vpop.xlane.xlu0 %277 }
 0x16c   :  { %v317_v46 = vrot.slane %v316_v42, 2  ;;  %v284_v47 = vpop.xlane.xlu1 %283  ;;  %v309_v48 = vrot.slane %v278_v45, 4 }
 0x16d   :  { %v365_v49 = vrot.slane %v364_v44, 2  ;;  %v327_v50 = vrot.slane %v284_v47, 4 }
 0x16e   :  { %v318_v51 = vmax.f32 %v316_v42, %v317_v46  ;;  %v310_v52 = vmax.f32 %v278_v45, %v309_v48 }
 0x16f   :  { %v366_v53 = vmax.f32 %v364_v44, %v365_v49  ;;  %v328_v54 = vmax.f32 %v284_v47, %v327_v50  ;;  %v294_v55 = vpop.xlane.xlu0 %293 }
 0x170   :  { %v319_v43 = vrot.slane %v318_v51, 1  ;;  %v311_v56 = vrot.slane %v310_v52, 2  ;;  %v300_v57 = vpop.xlane.xlu1 %299  ;;  %v357_v58 = vrot.slane %v294_v55, 4 }
 0x171   :  { %v367_v59 = vrot.slane %v366_v53, 1  ;;  %v329_v60 = vrot.slane %v328_v54, 2  ;;  %v375_v61 = vrot.slane %v300_v57, 4 }
 0x172   :  { %v320_v62 = vmax.f32 %v318_v51, %v319_v43  ;;  %v312_v63 = vmax.f32 %v310_v52, %v311_v56  ;;  %v358_v0 = vmax.f32 %v294_v55, %v357_v58 }
 0x173   :  { %v368_v1 = vmax.f32 %v366_v53, %v367_v59  ;;  %v330_v2 = vmax.f32 %v328_v54, %v329_v60  ;;  %v376_v3 = vmax.f32 %v300_v57, %v375_v61  ;;  %v982_v21 = vpop.xlane.xlu0 %297 }
 0x174   :  { %v406_v22 = vsub.f32 %v280_v38, %v320_v62  ;;  %v313_v23 = vrot.slane %v312_v63, 1  ;;  %v359_v24 = vrot.slane %v358_v0, 2  ;;  %v984_v25 = vpop.xlane.xlu1 %281  ;;  %v369_v26 = vrot.slane %v982_v21, 4 }
 0x175   :  { %v414_v27 = vsub.f32 %v296_v39, %v368_v1  ;;  %v331_v28 = vrot.slane %v330_v2, 1  ;;  %v377_v20 = vrot.slane %v376_v3, 2  ;;  %v321_v29 = vrot.slane %v984_v25, 4 }
 0x176   :  { %v423_v30 = vmul.f32 1.442695, %v406_v22  ;;  %v314_v31 = vmax.f32 %v312_v63, %v313_v23  ;;  %v360_v32 = vmax.f32 %v358_v0, %v359_v24  ;;  %v370_v33 = vmax.f32 %v982_v21, %v369_v26 }
 0x177   :  { %v439_v34 = vmul.f32 1.442695, %v414_v27  ;;  %v332_v35 = vmax.f32 %v330_v2, %v331_v28  ;;  %v378_v36 = vmax.f32 %v376_v3, %v377_v20  ;;  %v322_v37 = vmax.f32 %v984_v25, %v321_v29  ;;  %v990_v38 = vpop.xlane.xlu0 %285 }
 0x178   :  { %727 = vpow2.f32 %v423_v30  ;;  %v405_v40 = vsub.f32 %v278_v45, %v314_v31  ;;  %v361_v41 = vrot.slane %v360_v32, 1  ;;  %v371_v39 = vrot.slane %v370_v33, 2  ;;  %v992_v42 = vpop.xlane.xlu1 %287 }
 0x179   :  { %729 = vpow2.f32 %v439_v34  ;;  %v408_v44 = vsub.f32 %v284_v47, %v332_v35  ;;  %v379_v46 = vrot.slane %v378_v36, 1  ;;  %v323_v48 = vrot.slane %v322_v37, 2 }
 0x17a   :  { %v421_v49 = vmul.f32 1.442695, %v405_v40  ;;  %v362_v50 = vmax.f32 %v360_v32, %v361_v41  ;;  %v372_v51 = vmax.f32 %v370_v33, %v371_v39  ;;  %v339_v52 = vrot.slane %v992_v42, 4 }
 0x17b   :  { %v427_v53 = vmul.f32 1.442695, %v408_v44  ;;  %v380_v54 = vmax.f32 %v378_v36, %v379_v46  ;;  %v324_v43 = vmax.f32 %v322_v37, %v323_v48  ;;  %v333_v56 = vrot.slane %v990_v38, 4  ;;  %v996_v58 = vpop.xlane.xlu0 %301 }
 0x17c   :  { %731 = vpow2.f32 %v421_v49  ;;  %v413_v45 = vsub.f32 %v294_v55, %v362_v50  ;;  %v373_v59 = vrot.slane %v372_v51, 1  ;;  %v340_v60 = vmax.f32 %v992_v42, %v339_v52  ;;  %v999_v47 = vpop.xlane.xlu1 %303 }
 0x17d   :  { %733 = vpow2.f32 %v427_v53  ;;  %v416_v61 = vsub.f32 %v300_v57, %v380_v54  ;;  %v325_v62 = vrot.slane %v324_v43, 1  ;;  %v334_v63 = vmax.f32 %v990_v38, %v333_v56 }
 0x17e   :  { %v437_v0 = vmul.f32 1.442695, %v413_v45  ;;  %v374_v1 = vmax.f32 %v372_v51, %v373_v59  ;;  %v341_v2 = vrot.slane %v340_v60, 2  ;;  %v387_v3 = vrot.slane %v999_v47, 4 }
 0x17f   :  { %v443_v22 = vmul.f32 1.442695, %v416_v61  ;;  %v326_v23 = vmax.f32 %v324_v43, %v325_v62  ;;  %v335_v24 = vrot.slane %v334_v63, 2  ;;  %v381_v55 = vrot.slane %v996_v58, 4  ;;  %v1008_v20 = vpop.xlane.xlu0 %289 }
 0x180   :  { %735 = vpow2.f32 %v437_v0  ;;  %v415_v26 = vsub.f32 %v982_v21, %v374_v1  ;;  %v342_v27 = vmax.f32 %v340_v60, %v341_v2  ;;  %v388_v28 = vmax.f32 %v999_v47, %v387_v3  ;;  %v1006_v57 = vpop.xlane.xlu1 %291 }
 0x181   :  { %737 = vpow2.f32 %v443_v22  ;;  %v407_v29 = vsub.f32 %v984_v25, %v326_v23  ;;  %v336_v30 = vmax.f32 %v334_v63, %v335_v24  ;;  %v382_v31 = vmax.f32 %v996_v58, %v381_v55 }
 0x182   :  { %v441_v32 = vmul.f32 1.442695, %v415_v26  ;;  %v343_v33 = vrot.slane %v342_v27, 1  ;;  %v389_v34 = vrot.slane %v388_v28, 2  ;;  %v351_v35 = vrot.slane %v1006_v57, 4 }
 0x183   :  { %v425_v36 = vmul.f32 1.442695, %v407_v29  ;;  %v337_v21 = vrot.slane %v336_v30, 1  ;;  %v383_v37 = vrot.slane %v382_v31, 2  ;;  %v345_v40 = vrot.slane %v1008_v20, 4 }
 0x184   :  { %739 = vpow2.f32 %v441_v32  ;;  %v344_v41 = vmax.f32 %v342_v27, %v343_v33  ;;  %v390_v39 = vmax.f32 %v388_v28, %v389_v34  ;;  %v352_v44 = vmax.f32 %v1006_v57, %v351_v35 }
 0x185   :  { %v1015_v46 = vpop.eup %727  ;;  %741 = vpow2.f32 %v425_v36  ;;  %v338_v25 = vmax.f32 %v336_v30, %v337_v21  ;;  %v384_v48 = vmax.f32 %v382_v31, %v383_v37  ;;  %v346_v49 = vmax.f32 %v1008_v20, %v345_v40 }
 0x186   :  { %v1018_v50 = vpop.eup %729  ;;  %v459_v51 = vrot.slane %v1015_v46, 4  ;;  %v410_v52 = vsub.f32 %v992_v42, %v344_v41  ;;  %v391_v53 = vrot.slane %v390_v39, 1  ;;  %v353_v54 = vrot.slane %v352_v44, 2 }
 0x187   :  { %v507_v43 = vrot.slane %v1018_v50, 4  ;;  %v409_v56 = vsub.f32 %v990_v38, %v338_v25  ;;  %v385_v45 = vrot.slane %v384_v48, 1  ;;  %v347_v59 = vrot.slane %v346_v49, 2 }
 0x188   :  { %v460_v60 = vadd.f32 %v1015_v46, %v459_v51  ;;  %v431_v61 = vmul.f32 1.442695, %v410_v52  ;;  %v392_v62 = vmax.f32 %v390_v39, %v391_v53  ;;  %v354_v63 = vmax.f32 %v352_v44, %v353_v54 }
 0x189   :  { %v1025_v0 = vpop.eup %731  ;;  %v508_v1 = vadd.f32 %v1018_v50, %v507_v43  ;;  %v429_v2 = vmul.f32 1.442695, %v409_v56  ;;  %v386_v3 = vmax.f32 %v384_v48, %v385_v45  ;;  %v348_v42 = vmax.f32 %v346_v49, %v347_v59 }
 0x18a   :  { %v1028_v22 = vpop.eup %733  ;;  %v461_v23 = vrot.slane %v460_v60, 2  ;;  %v453_v24 = vrot.slane %v1025_v0, 4  ;;  %743 = vpow2.f32 %v431_v61  ;;  %v418_v38 = vsub.f32 %v999_v47, %v392_v62 }
 0x18b   :  { %v509_v55 = vrot.slane %v508_v1, 2  ;;  %v471_v26 = vrot.slane %v1028_v22, 4  ;;  %745 = vpow2.f32 %v429_v2  ;;  %v417_v27 = vsub.f32 %v996_v58, %v386_v3 }
 0x18c   :  { %v462_v28 = vadd.f32 %v461_v23, %v460_v60  ;;  %v454_v29 = vadd.f32 %v1025_v0, %v453_v24  ;;  %v447_v30 = vmul.f32 1.442695, %v418_v38  ;;  %v355_v31 = vrot.slane %v354_v63, 1 }
 0x18d   :  { %v1035_v32 = vpop.eup %735  ;;  %v510_v33 = vadd.f32 %v509_v55, %v508_v1  ;;  %v472_v34 = vadd.f32 %v1028_v22, %v471_v26  ;;  %v445_v35 = vmul.f32 1.442695, %v417_v27  ;;  %v349_v36 = vrot.slane %v348_v42, 1 }
 0x18e   :  { %v1038_v21 = vpop.eup %737  ;;  %v463_v47 = vrot.slane %v462_v28, 1  ;;  %v455_v37 = vrot.slane %v454_v29, 2  ;;  %v501_v40 = vrot.slane %v1035_v32, 4  ;;  %747 = vpow2.f32 %v447_v30 }
 0x18f   :  { %v511_v58 = vrot.slane %v510_v33, 1  ;;  %v473_v41 = vrot.slane %v472_v34, 2  ;;  %v519_v39 = vrot.slane %v1038_v21, 4  ;;  %749 = vpow2.f32 %v445_v35 }
 0x190   :  { %v464_v44 = vadd.f32 %v463_v47, %v462_v28  ;;  %v456_v25 = vadd.f32 %v455_v37, %v454_v29  ;;  %v502_v48 = vadd.f32 %v1035_v32, %v501_v40  ;;  %v356_v49 = vmax.f32 %v354_v63, %v355_v31 }
 0x191   :  { %v1043_v51 = vpop.eup %739  ;;  %v512_v52 = vadd.f32 %v511_v58, %v510_v33  ;;  %v474_v53 = vadd.f32 %v473_v41, %v472_v34  ;;  %v520_v54 = vadd.f32 %v1038_v21, %v519_v39  ;;  %v350_v43 = vmax.f32 %v348_v42, %v349_v36  ;;  %v1056_v34 = vpop.xlane.xlu1 %307 }
 0x192   :  { %v1046_v56 = vpop.eup %741  ;;  %751 = vrcp.f32 %v464_v44  ;;  %v457_v45 = vrot.slane %v456_v25, 1  ;;  %v503_v59 = vrot.slane %v502_v48, 2  ;;  %v513_v60 = vrot.slane %v1043_v51, 4 }
 0x193   :  { %753 = vrcp.f32 %v512_v52  ;;  %v475_v61 = vrot.slane %v474_v53, 1  ;;  %v521_v62 = vrot.slane %v520_v54, 2  ;;  %v465_v1 = vrot.slane %v1046_v56, 4 }
 0x194   :  { %v458_v63 = vadd.f32 %v457_v45, %v456_v25  ;;  %v504_v2 = vadd.f32 %v503_v59, %v502_v48  ;;  %v514_v3 = vadd.f32 %v1043_v51, %v513_v60  ;;  %v412_v23 = vsub.f32 %v1006_v57, %v356_v49 }
 0x195   :  { %v476_v24 = vadd.f32 %v475_v61, %v474_v53  ;;  %v522_v42 = vadd.f32 %v521_v62, %v520_v54  ;;  %v466_v38 = vadd.f32 %v1046_v56, %v465_v1  ;;  %v411_v55 = vsub.f32 %v1008_v20, %v350_v43  ;;  %v1061_v20 = vpop.xlane.xlu0 %305 }
 0x196   :  { %755 = vrcp.f32 %v458_v63  ;;  %v505_v26 = vrot.slane %v504_v2, 1  ;;  %v515_v27 = vrot.slane %v514_v3, 2  ;;  %v435_v28 = vmul.f32 1.442695, %v412_v23 }
 0x197   :  { %v1054_v29 = vpop.eup %743  ;;  %757 = vrcp.f32 %v476_v24  ;;  %v523_v30 = vrot.slane %v522_v42, 1  ;;  %v467_v31 = vrot.slane %v466_v38, 2  ;;  %v433_v33 = vmul.f32 1.442695, %v411_v55 }
 0x198   :  { %v1058_v35 = vpop.eup %745  ;;  %v506_v57 = vadd.f32 %v505_v26, %v504_v2  ;;  %v516_v36 = vadd.f32 %v515_v27, %v514_v3  ;;  %v483_v47 = vrot.slane %v1054_v29, 4  ;;  %759 = vpow2.f32 %v435_v28 }
 0x199   :  { %v524_v37 = vadd.f32 %v523_v30, %v522_v42  ;;  %v468_v40 = vadd.f32 %v467_v31, %v466_v38  ;;  %v477_v58 = vrot.slane %v1058_v35, 4  ;;  %761 = vpow2.f32 %v433_v33 }
 0x19a   :  { %763 = vrcp.f32 %v506_v57  ;;  %v517_v41 = vrot.slane %v516_v36, 1  ;;  %v484_v39 = vadd.f32 %v1054_v29, %v483_v47  ;;  %v399_v44 = vrot.slane %v1056_v34, 4 }
 0x19b   :  { %v1066_v25 = vpop.eup %747  ;;  %765 = vrcp.f32 %v524_v37  ;;  %v469_v48 = vrot.slane %v468_v40, 1  ;;  %v478_v49 = vadd.f32 %v1058_v35, %v477_v58  ;;  %v393_v52 = vrot.slane %v1061_v20, 4 }
 0x19c   :  { %v1070_v53 = vpop.eup %749  ;;  %v518_v54 = vadd.f32 %v517_v41, %v516_v36  ;;  %v485_v43 = vrot.slane %v484_v39, 2  ;;  %v531_v45 = vrot.slane %v1066_v25, 4  ;;  %v400_v59 = vmax.f32 %v1056_v34, %v399_v44 }
 0x19d   :  { %v470_v60 = vadd.f32 %v469_v48, %v468_v40  ;;  %v479_v61 = vrot.slane %v478_v49, 2  ;;  %v525_v62 = vrot.slane %v1070_v53, 4  ;;  %v394_v1 = vmax.f32 %v1061_v20, %v393_v52 }
 0x19e   :  { %767 = vrcp.f32 %v518_v54  ;;  %v486_v63 = vadd.f32 %v485_v43, %v484_v39  ;;  %v532_v2 = vadd.f32 %v1066_v25, %v531_v45  ;;  %v401_v3 = vrot.slane %v400_v59, 2 }
 0x19f   :  { %v752_v23 = vpop.eup %751  ;;  %769 = vrcp.f32 %v470_v60  ;;  %v480_v24 = vadd.f32 %v479_v61, %v478_v49  ;;  %v526_v42 = vadd.f32 %v1070_v53, %v525_v62  ;;  %v395_v38 = vrot.slane %v394_v1, 2 }
 0x1a0   :  { %v754_v55 = vpop.eup %753  ;;  %v552_v26 = vmul.f32 %v752_v23, %v1015_v46  ;;  %v487_v27 = vrot.slane %v486_v63, 1  ;;  %v533_v28 = vrot.slane %v532_v2, 2  ;;  %v402_v30 = vmax.f32 %v400_v59, %v401_v3 }
 0x1a1   :  { %v568_v31 = vmul.f32 %v754_v55, %v1018_v50  ;;  %v481_v33 = vrot.slane %v480_v24, 1  ;;  %v527_v57 = vrot.slane %v526_v42, 2  ;;  %v396_v36 = vmax.f32 %v394_v1, %v395_v38 }
 0x1a2   :  { %v582_v47 = vmul.f32 %v552_v26, %v841_v6  ;;  %v488_v37 = vadd.f32 %v487_v27, %v486_v63  ;;  %v534_v40 = vadd.f32 %v533_v28, %v532_v2  ;;  %v403_v58 = vrot.slane %v402_v30, 1 }
 0x1a3   :  { %v756_v41 = vpop.eup %755  ;;  %v590_v39 = vmul.f32 %v568_v31, %v846_v7  ;;  %v482_v44 = vadd.f32 %v481_v33, %v480_v24  ;;  %v528_v48 = vadd.f32 %v527_v57, %v526_v42  ;;  %v397_v49 = vrot.slane %v396_v36, 1 }
 0x1a4   :  { %v758_v46 = vpop.eup %757  ;;  %598 = vst.msk [vmem:[%s1186_s4 + $0x8] sm:$0xff] %vm44_vm0, %v582_v47  ;;  %v550_v50 = vmul.f32 %v756_v41, %v1025_v0  ;;  %771 = vrcp.f32 %v488_v37  ;;  %v535_v52 = vrot.slane %v534_v40, 1  ;;  %v404_v6 = vmax.f32 %v402_v30, %v403_v58 }
 0x1a5   :  { %v1087_v54 = vpop.eup %759  ;;  %606 = vst.msk [vmem:[%s1186_s4 + $0x48] sm:$0xff] %vm44_vm0, %v590_v39  ;;  %v556_v7 = vmul.f32 %v758_v46, %v1028_v22  ;;  %773 = vrcp.f32 %v482_v44  ;;  %v529_v43 = vrot.slane %v528_v48, 1  ;;  %v398_v45 = vmax.f32 %v396_v36, %v397_v49 }
 0x1a6   :  { %v1094_v59 = vpop.eup %761  ;;  %v581_v60 = vmul.f32 %v550_v50, %v831_v4  ;;  %v536_v0 = vadd.f32 %v535_v52, %v534_v40  ;;  %v495_v61 = vrot.slane %v1087_v54, 4  ;;  %v420_v62 = vsub.f32 %v1056_v34, %v404_v6 }
 0x1a7   :  { %v764_v1 = vpop.eup %763  ;;  %v584_v63 = vmul.f32 %v556_v7, %v871_v10  ;;  %v530_v2 = vadd.f32 %v529_v43, %v528_v48  ;;  %v489_v3 = vrot.slane %v1094_v59, 4  ;;  %v419_v22 = vsub.f32 %v1061_v20, %v398_v45 }
 0x1a8   :  { %v766_v23 = vpop.eup %765  ;;  %597 = vst.msk [vmem:[%s1186_s4] sm:$0xff] %vm44_vm0, %v581_v60  ;;  %v566_v4 = vmul.f32 %v764_v1, %v1035_v32  ;;  %775 = vrcp.f32 %v536_v0  ;;  %v496_v24 = vadd.f32 %v1087_v54, %v495_v61  ;;  %v451_v34 = vmul.f32 1.442695, %v420_v62 }
 0x1a9   :  { %600 = vst.msk [vmem:[%s1186_s4 + $0x18] sm:$0xff] %vm44_vm0, %v584_v63  ;;  %v572_v10 = vmul.f32 %v766_v23, %v1038_v21  ;;  %777 = vrcp.f32 %v530_v2  ;;  %v490_v20 = vadd.f32 %v1094_v59, %v489_v3  ;;  %v449_v42 = vmul.f32 1.442695, %v419_v22 }
 0x1aa   :  { %v589_v38 = vmul.f32 %v566_v4, %v836_v5  ;;  %v497_v55 = vrot.slane %v496_v24, 2  ;;  %779 = vpow2.f32 %v451_v34 }
 0x1ab   :  { %v768_v32 = vpop.eup %767  ;;  %v592_v26 = vmul.f32 %v572_v10, %v878_v11  ;;  %v491_v27 = vrot.slane %v490_v20, 2  ;;  %781 = vpow2.f32 %v449_v42 }
 0x1ac   :  { %v770_v28 = vpop.eup %769  ;;  %605 = vst.msk [vmem:[%s1186_s4 + $0x40] sm:$0xff] %vm44_vm0, %v589_v38  ;;  %v570_v21 = vmul.f32 %v768_v32, %v1043_v51  ;;  %v498_v30 = vadd.f32 %v497_v55, %v496_v24 }
 0x1ad   :  { %608 = vst.msk [vmem:[%s1186_s4 + $0x58] sm:$0xff] %vm44_vm0, %v592_v26  ;;  %v554_v5 = vmul.f32 %v770_v28, %v1046_v56  ;;  %v492_v31 = vadd.f32 %v491_v27, %v490_v20 }
 0x1ae   :  { %v591_v11 = vmul.f32 %v570_v21, %v856_v9  ;;  %v499_v33 = vrot.slane %v498_v30, 1 }
 0x1af   :  { %v583_v57 = vmul.f32 %v554_v5, %v851_v8  ;;  %v493_v36 = vrot.slane %v492_v31, 1 }
 0x1b0   :  { %607 = vst.msk [vmem:[%s1186_s4 + $0x50] sm:$0xff] %vm44_vm0, %v591_v11  ;;  %v500_v51 = vadd.f32 %v499_v33, %v498_v30 }
 0x1b1   :  { %v772_v47 = vpop.eup %771  ;;  %599 = vst.msk [vmem:[%s1186_s4 + $0x10] sm:$0xff] %vm44_vm0, %v583_v57  ;;  %v494_v56 = vadd.f32 %v493_v36, %v492_v31 }
 0x1b2   :  { %v774_v37 = vpop.eup %773  ;;  %v560_v9 = vmul.f32 %v772_v47, %v1054_v29  ;;  %783 = vrcp.f32 %v500_v51 }
 0x1b3   :  { %v558_v8 = vmul.f32 %v774_v37, %v1058_v35  ;;  %785 = vrcp.f32 %v494_v56 }
 0x1b4   :  { %v586_v40 = vmul.f32 %v560_v9, %v899_v14 }
 0x1b5   :  { %v776_v58 = vpop.eup %775  ;;  %v585_v41 = vmul.f32 %v558_v8, %v883_v12 }
 0x1b6   :  { %v778_v39 = vpop.eup %777  ;;  %602 = vst.msk [vmem:[%s1186_s4 + $0x28] sm:$0xff] %vm44_vm0, %v586_v40  ;;  %v576_v44 = vmul.f32 %v776_v58, %v1066_v25 }
 0x1b7   :  { %v780_v48 = vpop.eup %779  ;;  %601 = vst.msk [vmem:[%s1186_s4 + $0x20] sm:$0xff] %vm44_vm0, %v585_v41  ;;  %v574_v29 = vmul.f32 %v778_v39, %v1070_v53 }
 0x1b8   :  { %v782_v14 = vpop.eup %781  ;;  %v594_v35 = vmul.f32 %v576_v44, %v906_v15  ;;  %v543_v12 = vrot.slane %v780_v48, 4 }
 0x1b9   :  { %v593_v49 = vmul.f32 %v574_v29, %v888_v13  ;;  %v537_v46 = vrot.slane %v782_v14, 4 }
 0x1ba   :  { %610 = vst.msk [vmem:[%s1186_s4 + $0x68] sm:$0xff] %vm44_vm0, %v594_v35  ;;  %v544_v25 = vadd.f32 %v780_v48, %v543_v12 }
 0x1bb   :  { %609 = vst.msk [vmem:[%s1186_s4 + $0x60] sm:$0xff] %vm44_vm0, %v593_v49  ;;  %v538_v50 = vadd.f32 %v782_v14, %v537_v46 }
 0x1bc   :  { %v545_v53 = vrot.slane %v544_v25, 2 }
 0x1bd   :  { %v539_v52 = vrot.slane %v538_v50, 2 }
 0x1be   :  { %v546_v6 = vadd.f32 %v545_v53, %v544_v25 }
 0x1bf   :  { %v784_v15 = vpop.eup %783  ;;  %v540_v7 = vadd.f32 %v539_v52, %v538_v50 }
 0x1c0   :  { %v786_v43 = vpop.eup %785  ;;  %v564_v13 = vmul.f32 %v784_v15, %v1087_v54  ;;  %v547_v45 = vrot.slane %v546_v6, 1 }
 0x1c1   :  { %v562_v60 = vmul.f32 %v786_v43, %v1094_v59  ;;  %v541_v0 = vrot.slane %v540_v7, 1 }
 0x1c2   :  { %v588_v61 = vmul.f32 %v564_v13, %v927_v18  ;;  %v548_v62 = vadd.f32 %v547_v45, %v546_v6 }
 0x1c3   :  { %v587_v1 = vmul.f32 %v562_v60, %v911_v16  ;;  %v542_v63 = vadd.f32 %v541_v0, %v540_v7 }
 0x1c4   :  { %604 = vst.msk [vmem:[%s1186_s4 + $0x38] sm:$0xff] %vm44_vm0, %v588_v61  ;;  %787 = vrcp.f32 %v548_v62 }
 0x1c5   :  { %603 = vst.msk [vmem:[%s1186_s4 + $0x30] sm:$0xff] %vm44_vm0, %v587_v1  ;;  %789 = vrcp.f32 %v542_v63 }
 0x1d1   :  { %v788_v54 = vpop.eup %787 }
 0x1d2   :  { %v790_v59 = vpop.eup %789  ;;  %v580_v2 = vmul.f32 %v788_v54, %v780_v48 }
 0x1d3   :  { %v578_v18 = vmul.f32 %v790_v59, %v782_v14 }
 0x1d4   :  { %v596_v3 = vmul.f32 %v580_v2, %v934_v19 }
 0x1d5   :  { %v595_v16 = vmul.f32 %v578_v18, %v916_v17 }
 0x1d6   :  { %612 = vst.msk [vmem:[%s1186_s4 + $0x78] sm:$0xff] %vm44_vm0, %v596_v3 }
 0x1d7   :  { %611 = vst.msk [vmem:[%s1186_s4 + $0x70] sm:$0xff] %vm44_vm0, %v595_v16 }

</bundles_post_ra>
